<compile_context>
chip_gen: v6e
topology: v6e:2x2x1
jax: 0.10.0
libtpu: 0.0.40
codegen_flags: <defaults>
</compile_context>

<pallas_src>
import jax
import jax.numpy as jnp
from jax.experimental import pallas as pl
from jax.experimental.pallas import tpu as pltpu


_TARGET_STEP_BYTES = 4 << 20   # ~4 MiB combined in+out HBM traffic per grid step
_VMEM_BUDGET_BYTES = 12 << 20  # double-buffered blocks stay under v5e's 16 MiB default


def _round_up(x, m):
    return ((x + m - 1) // m) * m


def _choose_tiles(N, R, C_in, C_out, itemsize, target_step_bytes, vmem_budget_bytes):
    """Pick (n_blk, r_tile).

    R is either <= 8 or a multiple of 8 (the wrapper guarantees this), so a
    legal full-sublane row tile always exists.
    """
    # Combined HBM traffic (input + output) per spatial row (128 lanes) per image.
    row_bytes = 128 * (C_in + C_out) * itemsize
    # Rows per (single-image) step that hit the traffic target / VMEM budget
    # (x2 for the double-buffered input + output blocks).
    target_rows = max(8, -(-target_step_bytes // row_bytes))
    vmem_rows = max(8, vmem_budget_bytes // (2 * row_bytes))
    cap = min(target_rows, vmem_rows)
    cap -= cap % 8

    if R <= cap or R % 8 != 0:
        r_tile = R                          # whole extent: always a legal block dim
    else:
        r_tile = 8                          # 8 always divides R here (R % 8 == 0)
        for d in range(cap, 7, -8):
            if R % d == 0:
                r_tile = d
                break

    # Batch blocking: pack several images per step while the step is still
    # below the traffic target and inside the VMEM budget.
    n_blk = 1
    for d in range(1, N + 1):
        if N % d:
            continue
        step_bytes = d * r_tile * row_bytes
        if 2 * step_bytes > vmem_budget_bytes:
            break
        n_blk = d
        if step_bytes >= target_step_bytes:
            break
    return n_blk, r_tile


def outconv_kernel(w_ref, b_ref, x_ref, o_ref):
    # w_ref : SMEM (C_out * C_in,)  flattened 1x1-conv weights (f32 scalars)
    # b_ref : SMEM (C_out,)         biases (f32 scalars)
    # x_ref : VMEM (n_blk, C_in,  r_tile, 128)  lane/sublane-dense activations
    # o_ref : VMEM (n_blk, C_out, r_tile, 128)  lane/sublane-dense output
    c_in = x_ref.shape[1]
    c_out = o_ref.shape[1]
    for c in range(c_out):                  # tiny channel counts -> unrolled VPU FMAs
        acc = x_ref[:, 0:1].astype(jnp.float32) * w_ref[c * c_in + 0]
        for k in range(1, c_in):
            acc = acc + x_ref[:, k:k + 1].astype(jnp.float32) * w_ref[c * c_in + k]
        o_ref[:, c:c + 1] = (acc + b_ref[c]).astype(o_ref.dtype)


def out_conv(x_nchw, weight, bias, *,
             target_step_bytes=_TARGET_STEP_BYTES,
             vmem_budget_bytes=_VMEM_BUDGET_BYTES):
    """nn.Conv2d(C_in, C_out, kernel_size=1) forward with bias. NCHW in/out.

    x_nchw : (N, C_in, H, W)
    weight : (C_out, C_in, 1, 1)   (PyTorch layout)
    bias   : (C_out,)
    returns: (N, C_out, H, W)
    """
    N, C_in, H, W = x_nchw.shape
    C_out = weight.shape[0]
    HW = H * W

    # Lane padding: spatial must be a multiple of 128 lanes.  For large images
    # additionally pad the row count to a multiple of 8 so row tiles can be
    # full-sublane and still divide the padded extent (at most 1023 extra
    # lanes -- no pad at all for the common power-of-two sizes).
    HW_pad = _round_up(HW, 128)
    R = HW_pad // 128
    if R > 8 and R % 8 != 0:
        R = _round_up(R, 8)
        HW_pad = R * 128

    x_rows = x_nchw.reshape(N, C_in, HW)
    if HW_pad != HW:
        x_rows = jnp.pad(x_rows, ((0, 0), (0, 0), (0, HW_pad - HW)))
    x4 = x_rows.reshape(N, C_in, R, 128)    # NCHW keeps spatial last: no transposes

    itemsize = jnp.dtype(x_nchw.dtype).itemsize
    n_blk, r_tile = _choose_tiles(N, R, C_in, C_out, itemsize,
                                  target_step_bytes, vmem_budget_bytes)

    w_flat = weight.reshape(C_out * C_in).astype(jnp.float32)   # 12 scalars -> SMEM (1-D)
    b1d = bias.reshape(C_out).astype(jnp.float32)               # 3 scalars  -> SMEM (1-D)

    grid = (N // n_blk, R // r_tile)

    out = pl.pallas_call(
        outconv_kernel,
        out_shape=jax.ShapeDtypeStruct((N, C_out, R, 128), x_nchw.dtype),
        grid_spec=pltpu.PrefetchScalarGridSpec(
            num_scalar_prefetch=0,
            grid=grid,
            in_specs=[
                pl.BlockSpec(memory_space=pltpu.MemorySpace.SMEM),   # weights
                pl.BlockSpec(memory_space=pltpu.MemorySpace.SMEM),   # bias
                pl.BlockSpec((n_blk, C_in, r_tile, 128),
                             lambda nb, rb: (nb, 0, rb, 0)),
            ],
            out_specs=pl.BlockSpec((n_blk, C_out, r_tile, 128),
                                   lambda nb, rb: (nb, 0, rb, 0)),
        ),
        compiler_params=pltpu.CompilerParams(
            dimension_semantics=("parallel", "parallel")),
    )(w_flat, b1d, x4)

    out = out.reshape(N, C_out, HW_pad)
    if HW_pad != HW:
        out = out[:, :, :HW]
    return out.reshape(N, C_out, H, W)


if __name__ == "__main__":
    key = jax.random.PRNGKey(0)
    k_x, k_w, k_b = jax.random.split(key, 3)

    N, C_in, H, W = 2, 4, 16, 16
    C_out = 3

    x = jax.random.normal(k_x, (N, C_in, H, W), dtype=jnp.float32)

    # Deterministic init mimicking nn.Conv2d defaults (uniform in +/- 1/sqrt(fan_in)).
    fan_in = C_in * 1 * 1
    bound = 1.0 / (fan_in ** 0.5)
    weight = jax.random.uniform(k_w, (C_out, C_in, 1, 1),
                                minval=-bound, maxval=bound, dtype=jnp.float32)
    bias = jax.random.uniform(k_b, (C_out,),
                              minval=-bound, maxval=bound, dtype=jnp.float32)

    out = out_conv(x, weight, bias)
    jax.block_until_ready(out)

    # Reference check in plain JAX (same math as the 1x1 conv).
    ref = jnp.einsum("nchw,oc->nohw", x, weight.reshape(C_out, C_in)) \
          + bias.reshape(1, C_out, 1, 1)
    assert out.shape == (N, C_out, H, W)
    assert jnp.allclose(out, ref, atol=1e-5), "mismatch vs reference"

    print("KERNEL_OK")
</pallas_src>

<mosaic_0001>
module attributes {stable_mosaic.version = 11 : i64} {
  func.func @outconv_kernel(%arg0: i32, %arg1: i32, %arg2: memref<12xf32, #tpu.memory_space<smem>>, %arg3: memref<3xf32, #tpu.memory_space<smem>>, %arg4: memref<2x4x2x128xf32, #tpu.memory_space<vmem>>, %arg5: memref<2x3x2x128xf32, #tpu.memory_space<vmem>>) attributes {dimension_semantics = [#tpu.dimension_semantics<parallel>, #tpu.dimension_semantics<parallel>], iteration_bounds = array<i64: 1, 1>, scalar_prefetch = 0 : i64, scratch_operands = 0 : i64, tpu.core_type = #tpu.core_type<tc>, window_params = [{transform_indices = @transform_0, window_bounds = array<i64: 12>}, {transform_indices = @transform_1, window_bounds = array<i64: 3>}, {transform_indices = @transform_2, window_bounds = array<i64: 2, 4, 2, 128>}, {transform_indices = @transform_3, window_bounds = array<i64: 2, 3, 2, 128>}]} {
    %c0 = arith.constant 0 : index
    %c0_0 = arith.constant 0 : index
    %c0_1 = arith.constant 0 : index
    %c0_2 = arith.constant 0 : index
    %0 = vector.load %arg4[%c0, %c0_0, %c0_1, %c0_2] : memref<2x4x2x128xf32, #tpu.memory_space<vmem>>, vector<2x1x2x128xf32>
    %c0_3 = arith.constant 0 : index
    %1 = memref.load %arg2[%c0_3] : memref<12xf32, #tpu.memory_space<smem>>
    %2 = vector.broadcast %1 : f32 to vector<2x1x2x128xf32>
    %3 = arith.mulf %0, %2 : vector<2x1x2x128xf32>
    %c0_4 = arith.constant 0 : index
    %c1 = arith.constant 1 : index
    %c0_5 = arith.constant 0 : index
    %c0_6 = arith.constant 0 : index
    %4 = vector.load %arg4[%c0_4, %c1, %c0_5, %c0_6] : memref<2x4x2x128xf32, #tpu.memory_space<vmem>>, vector<2x1x2x128xf32>
    %c1_7 = arith.constant 1 : index
    %5 = memref.load %arg2[%c1_7] : memref<12xf32, #tpu.memory_space<smem>>
    %6 = vector.broadcast %5 : f32 to vector<2x1x2x128xf32>
    %7 = arith.mulf %4, %6 : vector<2x1x2x128xf32>
    %8 = arith.addf %3, %7 : vector<2x1x2x128xf32>
    %c0_8 = arith.constant 0 : index
    %c2 = arith.constant 2 : index
    %c0_9 = arith.constant 0 : index
    %c0_10 = arith.constant 0 : index
    %9 = vector.load %arg4[%c0_8, %c2, %c0_9, %c0_10] : memref<2x4x2x128xf32, #tpu.memory_space<vmem>>, vector<2x1x2x128xf32>
    %c2_11 = arith.constant 2 : index
    %10 = memref.load %arg2[%c2_11] : memref<12xf32, #tpu.memory_space<smem>>
    %11 = vector.broadcast %10 : f32 to vector<2x1x2x128xf32>
    %12 = arith.mulf %9, %11 : vector<2x1x2x128xf32>
    %13 = arith.addf %8, %12 : vector<2x1x2x128xf32>
    %c0_12 = arith.constant 0 : index
    %c3 = arith.constant 3 : index
    %c0_13 = arith.constant 0 : index
    %c0_14 = arith.constant 0 : index
    %14 = vector.load %arg4[%c0_12, %c3, %c0_13, %c0_14] : memref<2x4x2x128xf32, #tpu.memory_space<vmem>>, vector<2x1x2x128xf32>
    %c3_15 = arith.constant 3 : index
    %15 = memref.load %arg2[%c3_15] : memref<12xf32, #tpu.memory_space<smem>>
    %16 = vector.broadcast %15 : f32 to vector<2x1x2x128xf32>
    %17 = arith.mulf %14, %16 : vector<2x1x2x128xf32>
    %18 = arith.addf %13, %17 : vector<2x1x2x128xf32>
    %c0_16 = arith.constant 0 : index
    %19 = memref.load %arg3[%c0_16] : memref<3xf32, #tpu.memory_space<smem>>
    %20 = vector.broadcast %19 : f32 to vector<2x1x2x128xf32>
    %21 = arith.addf %18, %20 : vector<2x1x2x128xf32>
    %c0_17 = arith.constant 0 : index
    %c0_18 = arith.constant 0 : index
    %c0_19 = arith.constant 0 : index
    %c0_20 = arith.constant 0 : index
    %22 = vector.load %arg5[%c0_17, %c0_18, %c0_19, %c0_20] : memref<2x3x2x128xf32, #tpu.memory_space<vmem>>, vector<2x1x2x128xf32>
    tpu.vector_store %arg5[%c0_17, %c0_18, %c0_19, %c0_20], %21 {strides = array<i32>} : memref<2x3x2x128xf32, #tpu.memory_space<vmem>>, vector<2x1x2x128xf32>,
    %c0_21 = arith.constant 0 : index
    %c0_22 = arith.constant 0 : index
    %c0_23 = arith.constant 0 : index
    %c0_24 = arith.constant 0 : index
    %23 = vector.load %arg4[%c0_21, %c0_22, %c0_23, %c0_24] : memref<2x4x2x128xf32, #tpu.memory_space<vmem>>, vector<2x1x2x128xf32>
    %c4 = arith.constant 4 : index
    %24 = memref.load %arg2[%c4] : memref<12xf32, #tpu.memory_space<smem>>
    %25 = vector.broadcast %24 : f32 to vector<2x1x2x128xf32>
    %26 = arith.mulf %23, %25 : vector<2x1x2x128xf32>
    %c0_25 = arith.constant 0 : index
    %c1_26 = arith.constant 1 : index
    %c0_27 = arith.constant 0 : index
    %c0_28 = arith.constant 0 : index
    %27 = vector.load %arg4[%c0_25, %c1_26, %c0_27, %c0_28] : memref<2x4x2x128xf32, #tpu.memory_space<vmem>>, vector<2x1x2x128xf32>
    %c5 = arith.constant 5 : index
    %28 = memref.load %arg2[%c5] : memref<12xf32, #tpu.memory_space<smem>>
    %29 = vector.broadcast %28 : f32 to vector<2x1x2x128xf32>
    %30 = arith.mulf %27, %29 : vector<2x1x2x128xf32>
    %31 = arith.addf %26, %30 : vector<2x1x2x128xf32>
    %c0_29 = arith.constant 0 : index
    %c2_30 = arith.constant 2 : index
    %c0_31 = arith.constant 0 : index
    %c0_32 = arith.constant 0 : index
    %32 = vector.load %arg4[%c0_29, %c2_30, %c0_31, %c0_32] : memref<2x4x2x128xf32, #tpu.memory_space<vmem>>, vector<2x1x2x128xf32>
    %c6 = arith.constant 6 : index
    %33 = memref.load %arg2[%c6] : memref<12xf32, #tpu.memory_space<smem>>
    %34 = vector.broadcast %33 : f32 to vector<2x1x2x128xf32>
    %35 = arith.mulf %32, %34 : vector<2x1x2x128xf32>
    %36 = arith.addf %31, %35 : vector<2x1x2x128xf32>
    %c0_33 = arith.constant 0 : index
    %c3_34 = arith.constant 3 : index
    %c0_35 = arith.constant 0 : index
    %c0_36 = arith.constant 0 : index
    %37 = vector.load %arg4[%c0_33, %c3_34, %c0_35, %c0_36] : memref<2x4x2x128xf32, #tpu.memory_space<vmem>>, vector<2x1x2x128xf32>
    %c7 = arith.constant 7 : index
    %38 = memref.load %arg2[%c7] : memref<12xf32, #tpu.memory_space<smem>>
    %39 = vector.broadcast %38 : f32 to vector<2x1x2x128xf32>
    %40 = arith.mulf %37, %39 : vector<2x1x2x128xf32>
    %41 = arith.addf %36, %40 : vector<2x1x2x128xf32>
    %c1_37 = arith.constant 1 : index
    %42 = memref.load %arg3[%c1_37] : memref<3xf32, #tpu.memory_space<smem>>
    %43 = vector.broadcast %42 : f32 to vector<2x1x2x128xf32>
    %44 = arith.addf %41, %43 : vector<2x1x2x128xf32>
    %c0_38 = arith.constant 0 : index
    %c1_39 = arith.constant 1 : index
    %c0_40 = arith.constant 0 : index
    %c0_41 = arith.constant 0 : index
    %45 = vector.load %arg5[%c0_38, %c1_39, %c0_40, %c0_41] : memref<2x3x2x128xf32, #tpu.memory_space<vmem>>, vector<2x1x2x128xf32>
    tpu.vector_store %arg5[%c0_38, %c1_39, %c0_40, %c0_41], %44 {strides = array<i32>} : memref<2x3x2x128xf32, #tpu.memory_space<vmem>>, vector<2x1x2x128xf32>,
    %c0_42 = arith.constant 0 : index
    %c0_43 = arith.constant 0 : index
    %c0_44 = arith.constant 0 : index
    %c0_45 = arith.constant 0 : index
    %46 = vector.load %arg4[%c0_42, %c0_43, %c0_44, %c0_45] : memref<2x4x2x128xf32, #tpu.memory_space<vmem>>, vector<2x1x2x128xf32>
    %c8 = arith.constant 8 : index
    %47 = memref.load %arg2[%c8] : memref<12xf32, #tpu.memory_space<smem>>
    %48 = vector.broadcast %47 : f32 to vector<2x1x2x128xf32>
    %49 = arith.mulf %46, %48 : vector<2x1x2x128xf32>
    %c0_46 = arith.constant 0 : index
    %c1_47 = arith.constant 1 : index
    %c0_48 = arith.constant 0 : index
    %c0_49 = arith.constant 0 : index
    %50 = vector.load %arg4[%c0_46, %c1_47, %c0_48, %c0_49] : memref<2x4x2x128xf32, #tpu.memory_space<vmem>>, vector<2x1x2x128xf32>
    %c9 = arith.constant 9 : index
    %51 = memref.load %arg2[%c9] : memref<12xf32, #tpu.memory_space<smem>>
    %52 = vector.broadcast %51 : f32 to vector<2x1x2x128xf32>
    %53 = arith.mulf %50, %52 : vector<2x1x2x128xf32>
    %54 = arith.addf %49, %53 : vector<2x1x2x128xf32>
    %c0_50 = arith.constant 0 : index
    %c2_51 = arith.constant 2 : index
    %c0_52 = arith.constant 0 : index
    %c0_53 = arith.constant 0 : index
    %55 = vector.load %arg4[%c0_50, %c2_51, %c0_52, %c0_53] : memref<2x4x2x128xf32, #tpu.memory_space<vmem>>, vector<2x1x2x128xf32>
    %c10 = arith.constant 10 : index
    %56 = memref.load %arg2[%c10] : memref<12xf32, #tpu.memory_space<smem>>
    %57 = vector.broadcast %56 : f32 to vector<2x1x2x128xf32>
    %58 = arith.mulf %55, %57 : vector<2x1x2x128xf32>
    %59 = arith.addf %54, %58 : vector<2x1x2x128xf32>
    %c0_54 = arith.constant 0 : index
    %c3_55 = arith.constant 3 : index
    %c0_56 = arith.constant 0 : index
    %c0_57 = arith.constant 0 : index
    %60 = vector.load %arg4[%c0_54, %c3_55, %c0_56, %c0_57] : memref<2x4x2x128xf32, #tpu.memory_space<vmem>>, vector<2x1x2x128xf32>
    %c11 = arith.constant 11 : index
    %61 = memref.load %arg2[%c11] : memref<12xf32, #tpu.memory_space<smem>>
    %62 = vector.broadcast %61 : f32 to vector<2x1x2x128xf32>
    %63 = arith.mulf %60, %62 : vector<2x1x2x128xf32>
    %64 = arith.addf %59, %63 : vector<2x1x2x128xf32>
    %c2_58 = arith.constant 2 : index
    %65 = memref.load %arg3[%c2_58] : memref<3xf32, #tpu.memory_space<smem>>
    %66 = vector.broadcast %65 : f32 to vector<2x1x2x128xf32>
    %67 = arith.addf %64, %66 : vector<2x1x2x128xf32>
    %c0_59 = arith.constant 0 : index
    %c2_60 = arith.constant 2 : index
    %c0_61 = arith.constant 0 : index
    %c0_62 = arith.constant 0 : index
    %68 = vector.load %arg5[%c0_59, %c2_60, %c0_61, %c0_62] : memref<2x3x2x128xf32, #tpu.memory_space<vmem>>, vector<2x1x2x128xf32>
    tpu.vector_store %arg5[%c0_59, %c2_60, %c0_61, %c0_62], %67 {strides = array<i32>} : memref<2x3x2x128xf32, #tpu.memory_space<vmem>>, vector<2x1x2x128xf32>,
    return
  }
  func.func @transform_0(%arg0: i32, %arg1: i32) -> i32 {
    %c0_i32 = arith.constant 0 : i32
    %c0_i32_0 = arith.constant 0 : i32
    return %c0_i32 : i32
  }
  func.func @transform_1(%arg0: i32, %arg1: i32) -> i32 {
    %c0_i32 = arith.constant 0 : i32
    %c0_i32_0 = arith.constant 0 : i32
    return %c0_i32 : i32
  }
  func.func @transform_2(%arg0: i32, %arg1: i32) -> (i32, i32, i32, i32) {
    %c0_i32 = arith.constant 0 : i32
    %c0_i32_0 = arith.constant 0 : i32
    %c0_i32_1 = arith.constant 0 : i32
    return %arg0, %c0_i32, %arg1, %c0_i32_0 : i32, i32, i32, i32
  }
  func.func @transform_3(%arg0: i32, %arg1: i32) -> (i32, i32, i32, i32) {
    %c0_i32 = arith.constant 0 : i32
    %c0_i32_0 = arith.constant 0 : i32
    %c0_i32_1 = arith.constant 0 : i32
    return %arg0, %c0_i32, %arg1, %c0_i32_0 : i32, i32, i32, i32
  }
}

</mosaic_0001>

<bundles_post_ra>
// kernel: tpu_custom_call.1
= control target key start
LH: loop header
LB: loop body
LE: loop exit
PB: predicated region body
PF: predicated region fallthrough
CT: control target
= control target key end

     0   :  { %8 = vsyncpa [#allocation5], 0  ;;  %s351_s0 = inlined_call_operand.hbm [shape: f32[12], index: 0, kind: input, shape index: {}]   ;;  %s352_s1 = inlined_call_operand.vmem [shape: f32[3], index: 1, kind: input, shape index: {}]   ;;  %s353_s2 = inlined_call_operand.hbm [shape: f32[2,4,2,128], index: 2, kind: input, shape index: {}]   ;;  %s354_s3 = inlined_call_operand.hbm [shape: f32[2,3,2,128], index: 3, kind: output, shape index: {}]  }
   0x1   :  { %9 = vsyncpa [#allocation6], 0 }
   0x2   :  { %10 = vsyncpa [#allocation3], 0 }
   0x3   :  { %11 = vsyncpa [#allocation4], 0  ;;  %s26_s14 = sshll.u32 %s352_s1, 4  ;;  %s271_s15 = smov [#allocation2]   ;;  %s27_s14 = int_to_ptr.vmem [resolvable:$true] %s26_s14 }
   0x4   :  { %19 = dma.hbm_to_smem %s351_s0, 16, %s271_s15, [#allocation5]  }
   0x5   :  { %s211_s18 = scalar_lea.vmem %s27_s14, 16  ;;  %p216_p1 = scmp.lt.s32.totalorder %s27_s14, %s27_s14 }
   0x6   :  { %p212_p0 = scmp.ne.s32.totalorder %s27_s14, %s211_s18  ;;  %p217_p2 = scmp.lt.s32.totalorder %s211_s18, %s211_s18 }
   0x8   :  { %p218_p3 = por %p217_p2, %p216_p1 }
   0xa   :  { %p219_p4 = pnand %p218_p3, %p212_p0 }
   0xc   :  { %222 = shalt.err (!%p219_p4)
}
   0xd   :  { %s272_s19 = smov [#allocation7]   ;;  %s273_s20 = smov [#allocation8]  }
   0xe   :  { %29 = dma.vmem_to_smem %s27_s14, 16, %s272_s19, [#allocation6]  }
   0xf   :  { %s35_s21 = sshll.u32 %s273_s20, 4  ;;  %s36_s21 = int_to_ptr.vmem [resolvable:$true] %s35_s21 }
  0x10   :  { %s231_s22 = scalar_lea.vmem %s36_s21, 256  ;;  %p236_p6 = scmp.lt.s32.totalorder %s36_s21, %s36_s21 }
  0x11   :  { %p232_p5 = scmp.ne.s32.totalorder %s36_s21, %s231_s22  ;;  %p237_p7 = scmp.lt.s32.totalorder %s231_s22, %s231_s22 }
  0x13   :  { %p238_p8 = por %p237_p7, %p236_p6 }
  0x15   :  { %p239_p9 = pnand %p238_p8, %p232_p5 }
  0x17   :  { %242 = shalt.err (!%p239_p9)
}
  0x18   :  { %s274_s0 = smov 32   ;;  %s275_s1 = smov 2  }
  0x19   :  { %41 = dma.hbm_to_vmem [thread:$0]  %s353_s2, 256, %s36_s21, [#allocation3], %s274_s0, %s274_s0, %s275_s1  }
  0x1a   :  { %263 = dma.done.wait [#allocation5], 16  }
  0x1b   :  { %264 = vsyncadd [#allocation5], 4294967280 }
  0x1c   :  { %265 = dma.done.wait [#allocation6], 16  }
  0x1d   :  { %266 = vsyncadd [#allocation6], 4294967280 }
  0x1e   :  { %267 = dma.done.wait [#allocation3], 256  }
  0x1f   :  { %268 = vsyncadd [#allocation3], 4294967040 }
  0x20   :  { %51 = sfence }
  0x21   :  { %s54_s25 = sld [smem:[#allocation2]]  ;;  %v52_v0 = vld [vmem:[#allocation8] sm:$0x3]  ;;  %v53_v1 = vld [vmem:[#allocation8 + $0x8] sm:$0x3]  ;;  %s276_s12 = smov [#allocation9]  }
  0x22   :  { %s184_s26 = sld [smem:[#allocation2 + $0x1]]  ;;  %v59_v2 = vld [vmem:[#allocation8 + $0x2] sm:$0x3]  ;;  %v60_v3 = vld [vmem:[#allocation8 + $0xa] sm:$0x3]  ;;  %s170_s13 = sshll.u32 %s276_s12, 4  ;;  %s171_s13 = int_to_ptr.vmem [resolvable:$true] %s170_s13 }
  0x23   :  { %s185_s27 = sld [smem:[#allocation2 + $0x2]]  ;;  %v68_v5 = vld [vmem:[#allocation8 + $0x4] sm:$0x3]  ;;  %v69_v6 = vld [vmem:[#allocation8 + $0xc] sm:$0x3]  ;;  %s243_s14 = scalar_lea.vmem %s171_s13, 192 }
  0x24   :  { %s309_s28 = sld [smem:[#allocation2 + $0x3]]  ;;  %v77_v9 = vld [vmem:[#allocation8 + $0x6] sm:$0x3]  ;;  %v78_v14 = vld [vmem:[#allocation8 + $0xe] sm:$0x3]  ;;  %p244_p10 = scmp.ne.s32.totalorder %s171_s13, %s243_s14 }
  0x25   :  { %s311_s29 = sld [smem:[#allocation7]]  ;;  %v91_v18 = vld [vmem:[#allocation8] sm:$0x3]  ;;  %v97_v19 = vld [vmem:[#allocation8 + $0x2] sm:$0x3]  ;;  %p248_p11 = scmp.lt.s32.totalorder %s171_s13, %s171_s13 }
  0x26   :  { %s313_s30 = sld [smem:[#allocation2 + $0x4]]  ;;  %v92_v23 = vld [vmem:[#allocation8 + $0x8] sm:$0x3]  ;;  %v98_v24 = vld [vmem:[#allocation8 + $0xa] sm:$0x3]  ;;  %p249_p12 = scmp.lt.s32.totalorder %s243_s14, %s243_s14 }
  0x27   :  { %v55_v4 = vstv %s54_s25  ;;  %s315_s2 = sld [smem:[#allocation2 + $0x5]]  ;;  %v105_v28 = vld [vmem:[#allocation8 + $0x4] sm:$0x3]  ;;  %v113_v33 = vld [vmem:[#allocation8 + $0x6] sm:$0x3] }
  0x28   :  { %v56_v7 = vmul.f32 %v55_v4, %v52_v0  ;;  %v62_v8 = vstv %s184_s26  ;;  %v57_v10 = vmul.f32 %v55_v4, %v53_v1  ;;  %s317_s4 = sld [smem:[#allocation2 + $0x6]]  ;;  %v106_v38 = vld [vmem:[#allocation8 + $0xc] sm:$0x3]  ;;  %v114_v39 = vld [vmem:[#allocation8 + $0xe] sm:$0x3]  ;;  %p250_p13 = por %p249_p12, %p248_p11 }
  0x29   :  { %v63_v11 = vmul.f32 %v62_v8, %v59_v2  ;;  %v71_v12 = vstv %s185_s27  ;;  %v64_v13 = vmul.f32 %v62_v8, %v60_v3  ;;  %s319_s5 = sld [smem:[#allocation2 + $0x7]]  ;;  %v128_v47 = vld [vmem:[#allocation8] sm:$0x3]  ;;  %v134_v48 = vld [vmem:[#allocation8 + $0x2] sm:$0x3] }
  0x2a   :  { %v72_v15 = vmul.f32 %v71_v12, %v68_v5  ;;  %v80_v16 = vstv %s309_s28  ;;  %v73_v17 = vmul.f32 %v71_v12, %v69_v6  ;;  %s322_s6 = sld [smem:[#allocation7 + $0x1]]  ;;  %v142_v53 = vld [vmem:[#allocation8 + $0x4] sm:$0x3]  ;;  %v129_v54 = vld [vmem:[#allocation8 + $0x8] sm:$0x3]  ;;  %p251_p0 = pnand %p250_p13, %p244_p10 }
  0x2b   :  { %v65_v20 = vadd.f32 %v63_v11, %v56_v7  ;;  %v81_v21 = vmul.f32 %v80_v16, %v77_v9  ;;  %v66_v22 = vadd.f32 %v64_v13, %v57_v10  ;;  %s324_s7 = sld [smem:[#allocation2 + $0x8]]  ;;  %v86_v25 = vstv %s311_s29  ;;  %v150_v59 = vld [vmem:[#allocation8 + $0x6] sm:$0x3]  ;;  %v135_v0 = vld [vmem:[#allocation8 + $0xa] sm:$0x3] }
  0x2c   :  { %v82_v26 = vmul.f32 %v80_v16, %v78_v14  ;;  %v94_v27 = vstv %s313_s30  ;;  %s328_s8 = sld [smem:[#allocation2 + $0x9]]  ;;  %v143_v1 = vld [vmem:[#allocation8 + $0xc] sm:$0x3]  ;;  %v151_v9 = vld [vmem:[#allocation8 + $0xe] sm:$0x3] }
  0x2d   :  { %v74_v29 = vadd.f32 %v72_v15, %v65_v20  ;;  %v75_v30 = vadd.f32 %v73_v17, %v66_v22  ;;  %v95_v31 = vmul.f32 %v94_v27, %v91_v18  ;;  %v100_v32 = vstv %s315_s2  ;;  %s331_s9 = sld [smem:[#allocation2 + $0xa]] }
  0x2e   :  { %v101_v34 = vmul.f32 %v100_v32, %v97_v19  ;;  %v108_v35 = vstv %s317_s4  ;;  %v96_v36 = vmul.f32 %v94_v27, %v92_v23  ;;  %v102_v37 = vmul.f32 %v100_v32, %v98_v24  ;;  %s334_s10 = sld [smem:[#allocation2 + $0xb]] }
  0x2f   :  { %v83_v40 = vadd.f32 %v81_v21, %v74_v29  ;;  %v84_v41 = vadd.f32 %v82_v26, %v75_v30  ;;  %v109_v42 = vmul.f32 %v108_v35, %v105_v28  ;;  %v116_v43 = vstv %s319_s5  ;;  %s337_s11 = sld [smem:[#allocation7 + $0x2]] }
  0x30   :  { %v103_v44 = vadd.f32 %v101_v34, %v95_v31  ;;  %v117_v45 = vmul.f32 %v116_v43, %v113_v33  ;;  %v104_v46 = vadd.f32 %v102_v37, %v96_v36  ;;  %v110_v51 = vmul.f32 %v108_v35, %v106_v38 }
  0x31   :  { %v87_v49 = vadd.f32 %v86_v25, %v83_v40  ;;  %v88_v50 = vadd.f32 %v86_v25, %v84_v41  ;;  %v118_v52 = vmul.f32 %v116_v43, %v114_v39  ;;  %v122_v56 = vstv %s322_s6 }
  0x32   :  { %v111_v55 = vadd.f32 %v109_v42, %v103_v44  ;;  %v131_v57 = vstv %s324_s7  ;;  %v137_v58 = vstv %s328_s8  ;;  %v112_v60 = vadd.f32 %v110_v51, %v104_v46 }
  0x33   :  { %89 = vst [vmem:[#allocation9] sm:$0x3] %v87_v49  ;;  %90 = vst [vmem:[#allocation9 + $0x6] sm:$0x3] %v88_v50  ;;  %v132_v61 = vmul.f32 %v131_v57, %v128_v47  ;;  %v138_v62 = vmul.f32 %v137_v58, %v134_v48  ;;  %v145_v63 = vstv %s331_s9  ;;  %v133_v5 = vmul.f32 %v131_v57, %v129_v54 }
  0x34   :  { %v119_v2 = vadd.f32 %v117_v45, %v111_v55  ;;  %v146_v3 = vmul.f32 %v145_v63, %v142_v53  ;;  %v153_v4 = vstv %s334_s10  ;;  %v120_v6 = vadd.f32 %v118_v52, %v112_v60 }
  0x35   :  { %v140_v7 = vadd.f32 %v138_v62, %v132_v61  ;;  %v154_v8 = vmul.f32 %v153_v4, %v150_v59  ;;  %v139_v11 = vmul.f32 %v137_v58, %v135_v0  ;;  %v147_v12 = vmul.f32 %v145_v63, %v143_v1 }
  0x36   :  { %v123_v10 = vadd.f32 %v122_v56, %v119_v2  ;;  %v124_v13 = vadd.f32 %v122_v56, %v120_v6  ;;  %v159_v15 = vstv %s337_s11  ;;  %v155_v17 = vmul.f32 %v153_v4, %v151_v9 }
  0x37   :  { %v148_v14 = vadd.f32 %v146_v3, %v140_v7  ;;  %v141_v16 = vadd.f32 %v139_v11, %v133_v5 }
  0x38   :  { %126 = vst [vmem:[#allocation9 + $0x2] sm:$0x3] %v123_v10  ;;  %127 = vst [vmem:[#allocation9 + $0x8] sm:$0x3] %v124_v13 }
  0x39   :  { %v156_v18 = vadd.f32 %v154_v8, %v148_v14  ;;  %v149_v19 = vadd.f32 %v147_v12, %v141_v16 }
  0x3b   :  { %v160_v20 = vadd.f32 %v159_v15, %v156_v18  ;;  %v157_v21 = vadd.f32 %v155_v17, %v149_v19 }
  0x3d   :  { %163 = vst [vmem:[#allocation9 + $0x4] sm:$0x3] %v160_v20  ;;  %v161_v22 = vadd.f32 %v159_v15, %v157_v21 }
  0x3f   :  { %164 = vst [vmem:[#allocation9 + $0xa] sm:$0x3] %v161_v22 }
  0x40   :  { %254 = shalt.err (!%p251_p0)
}
  0x41   :  { %176 = dma.vmem_to_hbm [thread:$0]  %s171_s13, 192, %s354_s3, [#allocation4], %s274_s0, %s274_s0, %s275_s1  }
  0x42   :  { %269 = dma.done.wait [#allocation4], 192  }
  0x43   :  { %270 = vsyncadd [#allocation4], 4294967104 }
  0x44   :  { %180 = vsyncpa [#allocation3], 1 }
  0x45   :  { %181 = vsyncpa [#allocation4], 1 }
  0x46   :  { %182 = vsyncpa [#allocation5], 1 }
  0x47   :  { %183 = vsyncpa [#allocation6], 1 }

</bundles_post_ra>
